<compile_context>
chip_gen: v7x
topology: tpu7x:2x2x1
jax: 0.10.0
libtpu: 0.0.40
codegen_flags: <defaults>
</compile_context>

<pallas_src>
import jax
import jax.numpy as jnp
from jax.experimental import pallas as pl
from jax.experimental.pallas import tpu as pltpu


def _make_kernel(use_bf16_mxu: bool):
    mm_dtype = jnp.bfloat16 if use_bf16_mxu else jnp.float32

    def keypoint_mlp_kernel(x_ref, w1t_ref, b1c_ref, w2t_ref, sc_ref,
                            prob_ref, mask_ref):
        # x_ref:    (C_in, TN)   native channels-first slab for this (batch, tile)
        # w1t_ref:  (H, C_in)    resident weight (Linear1, transposed)
        # b1c_ref:  (H, 1)       Linear1 bias as a column
        # w2t_ref:  (1, H)       Linear2 weight, lane-dense row
        # sc_ref:   (2,) SMEM    [b2, threshold]
        x = x_ref[...].astype(mm_dtype)
        w1t = w1t_ref[...].astype(mm_dtype)

        # Linear1 + ReLU: (H, C_in) @ (C_in, TN) -> (H, TN), f32 accumulation on MXU.
        h = jnp.dot(w1t, x, preferred_element_type=jnp.float32) + b1c_ref[...]
        h = jnp.maximum(h, 0.0)

        # Linear2 (+ scalar bias from SMEM): (1, H) @ (H, TN) -> (1, TN).
        logits = jnp.dot(w2t_ref[...], h,
                         preferred_element_type=jnp.float32) + sc_ref[0]

        p = jax.nn.sigmoid(logits)                       # EUP transcendental
        prob_ref[...] = p                                # lane-dense (1, TN) store
        mask_ref[...] = (p > sc_ref[1]).astype(jnp.int32)  # fused threshold mask

    return keypoint_mlp_kernel


def _choose_tn(N: int) -> int:
    # Prefer ~512-wide f32 tiles (1 MiB input block at C_in=512); fall back to the
    # largest 128-multiple divisor, else the full extent.
    if N % 512 == 0:
        return 512
    for tn in (256, 128):
        if N % tn == 0:
            return tn
    return N


def keypoint_weighting_forward(point_features, params, threshold, *,
                               use_bf16_mxu: bool = False):
    """point_features: (B, C_in, N) float32.

    Returns (P_keypoint_seg (B, N) float32, mask (B, N) bool).
    """
    B, C_in, N = point_features.shape
    w1, b1, w2, b2 = params                      # (C_in,H), (H,), (H,1), scalar-ish
    H = w1.shape[1]

    # Tiny one-time weight reorientations (the big activation tensor is NOT moved).
    w1t = jnp.asarray(w1, jnp.float32).T                       # (H, C_in)
    b1c = jnp.asarray(b1, jnp.float32).reshape(H, 1)           # (H, 1)
    w2t = jnp.asarray(w2, jnp.float32).reshape(H, 1).T         # (1, H)
    b2s = jnp.asarray(b2, jnp.float32).reshape(())
    scalars = jnp.stack([b2s, jnp.asarray(threshold, jnp.float32)])  # (2,) -> SMEM

    TN = _choose_tn(N)
    grid = (B, N // TN)

    probs3, mask3 = pl.pallas_call(
        _make_kernel(use_bf16_mxu),
        out_shape=(
            jax.ShapeDtypeStruct((B, 1, N), jnp.float32),
            jax.ShapeDtypeStruct((B, 1, N), jnp.int32),
        ),
        grid_spec=pltpu.PrefetchScalarGridSpec(
            num_scalar_prefetch=0,
            grid=grid,
            in_specs=[
                # Native (B, C_in, N) layout, N tiled onto lanes.
                pl.BlockSpec((pl.Squeezed(), C_in, TN), lambda b, n: (b, 0, n)),
                pl.BlockSpec((H, C_in), lambda b, n: (0, 0)),   # W1^T (resident)
                pl.BlockSpec((H, 1),    lambda b, n: (0, 0)),   # b1 column
                pl.BlockSpec((1, H),    lambda b, n: (0, 0)),   # W2^T row
                pl.BlockSpec(memory_space=pltpu.MemorySpace.SMEM),  # [b2, thr]
            ],
            out_specs=[
                pl.BlockSpec((pl.Squeezed(), 1, TN), lambda b, n: (b, 0, n)),
                pl.BlockSpec((pl.Squeezed(), 1, TN), lambda b, n: (b, 0, n)),
            ],
        ),
        compiler_params=pltpu.CompilerParams(
            dimension_semantics=("parallel", "parallel")),
    )(point_features, w1t, b1c, w2t, scalars)

    P_keypoint_seg = jnp.squeeze(probs3, axis=1)        # (B, N)
    mask = jnp.squeeze(mask3, axis=1).astype(jnp.bool_)  # (B, N)
    return P_keypoint_seg, mask


if __name__ == "__main__":
    key = jax.random.PRNGKey(0)
    # Small shapes consistent with the module: (B, C_in, N) point features.
    B, C_in, N, H = 2, 64, 256, 32
    k1, k2, k3, k4, k5 = jax.random.split(key, 5)

    point_features = jax.random.normal(k1, (B, C_in, N), dtype=jnp.float32)

    # Synthetic MLP parameters (cfg.KEYPOINT_WEIGHT.MLPS = [C_in, H, 1], bias=True).
    w1 = jax.random.normal(k2, (C_in, H), jnp.float32) * (1.0 / jnp.sqrt(C_in))
    b1 = jax.random.normal(k3, (H,), jnp.float32) * 0.01
    w2 = jax.random.normal(k4, (H, 1), jnp.float32) * (1.0 / jnp.sqrt(H))
    b2 = jax.random.normal(k5, (1, 1), jnp.float32) * 0.01
    threshold = 0.5

    probs, mask = keypoint_weighting_forward(
        point_features, (w1, b1, w2, b2), threshold, use_bf16_mxu=False)
    jax.block_until_ready((probs, mask))

    # Pure-JAX reference of the hot path (matches the PyTorch channels-last MLP).
    x_cl = jnp.transpose(point_features, (0, 2, 1))                  # (B, N, C_in)
    ref = jax.nn.sigmoid(
        jnp.maximum(x_cl @ w1 + b1, 0.0) @ w2 + b2.reshape(()))[..., 0]
    ref_mask = ref > threshold

    assert probs.shape == (B, N) and mask.shape == (B, N)
    assert jnp.allclose(probs, ref, atol=1e-5), "probability mismatch vs reference"
    # Only compare masks away from the decision boundary (accumulation-order jitter).
    far = jnp.abs(ref - threshold) > 1e-4
    assert bool(jnp.all(jnp.where(far, mask == ref_mask, True))), "mask mismatch"

    print("KERNEL_OK")
</pallas_src>

<mosaic_0001>
module attributes {stable_mosaic.version = 11 : i64} {
  func.func @keypoint_mlp_kernel(%arg0: i32, %arg1: i32, %arg2: memref<1x64x256xf32, #tpu.memory_space<vmem>>, %arg3: memref<32x64xf32, #tpu.memory_space<vmem>>, %arg4: memref<32x1xf32, #tpu.memory_space<vmem>>, %arg5: memref<1x32xf32, #tpu.memory_space<vmem>>, %arg6: memref<2xf32, #tpu.memory_space<smem>>, %arg7: memref<1x1x256xf32, #tpu.memory_space<vmem>>, %arg8: memref<1x1x256xi32, #tpu.memory_space<vmem>>) attributes {dimension_semantics = [#tpu.dimension_semantics<parallel>, #tpu.dimension_semantics<parallel>], iteration_bounds = array<i64: 2, 1>, scalar_prefetch = 0 : i64, scratch_operands = 0 : i64, tpu.core_type = #tpu.core_type<tc>, window_params = [{transform_indices = @transform_0, window_bounds = array<i64: 1, 64, 256>}, {pipeline_mode = #tpu.pipeline_mode<synchronous>, transform_indices = @transform_1, window_bounds = array<i64: 32, 64>}, {pipeline_mode = #tpu.pipeline_mode<synchronous>, transform_indices = @transform_2, window_bounds = array<i64: 32, 1>}, {pipeline_mode = #tpu.pipeline_mode<synchronous>, transform_indices = @transform_3, window_bounds = array<i64: 1, 32>}, {transform_indices = @transform_4, window_bounds = array<i64: 2>}, {transform_indices = @transform_5, window_bounds = array<i64: 1, 1, 256>}, {transform_indices = @transform_6, window_bounds = array<i64: 1, 1, 256>}]} {
    %c0 = arith.constant 0 : index
    %c0_0 = arith.constant 0 : index
    %c0_1 = arith.constant 0 : index
    %0 = vector.load %arg2[%c0, %c0_0, %c0_1] : memref<1x64x256xf32, #tpu.memory_space<vmem>>, vector<1x64x256xf32>
    %1 = vector.shape_cast %0 : vector<1x64x256xf32> to vector<64x256xf32>
    %c0_2 = arith.constant 0 : index
    %c0_3 = arith.constant 0 : index
    %2 = vector.load %arg3[%c0_2, %c0_3] : memref<32x64xf32, #tpu.memory_space<vmem>>, vector<32x64xf32>
    %cst = arith.constant dense<0.000000e+00> : vector<32x256xf32>
    %3 = tpu.matmul %2, %1, %cst {dimension_numbers = #tpu.dot_dimension_numbers<[1], [0], [0], [1], [0, 0, 1, 1], [], []>} : vector<32x64xf32>, vector<64x256xf32>, vector<32x256xf32> -> vector<32x256xf32>
    %c0_4 = arith.constant 0 : index
    %c0_5 = arith.constant 0 : index
    %4 = vector.load %arg4[%c0_4, %c0_5] : memref<32x1xf32, #tpu.memory_space<vmem>>, vector<32x1xf32>
    %5 = vector.broadcast %4 : vector<32x1xf32> to vector<32x256xf32>
    %6 = arith.addf %3, %5 : vector<32x256xf32>
    %cst_6 = arith.constant 0.000000e+00 : f32
    %7 = vector.broadcast %cst_6 : f32 to vector<32x256xf32>
    %8 = arith.maximumf %6, %7 : vector<32x256xf32>
    %c0_7 = arith.constant 0 : index
    %c0_8 = arith.constant 0 : index
    %9 = vector.load %arg5[%c0_7, %c0_8] : memref<1x32xf32, #tpu.memory_space<vmem>>, vector<1x32xf32>
    %cst_9 = arith.constant dense<0.000000e+00> : vector<1x256xf32>
    %10 = tpu.matmul %9, %8, %cst_9 {dimension_numbers = #tpu.dot_dimension_numbers<[1], [0], [0], [1], [0, 0, 1, 1], [], []>} : vector<1x32xf32>, vector<32x256xf32>, vector<1x256xf32> -> vector<1x256xf32>
    %c0_10 = arith.constant 0 : index
    %11 = memref.load %arg6[%c0_10] : memref<2xf32, #tpu.memory_space<smem>>
    %12 = vector.broadcast %11 : f32 to vector<1x256xf32>
    %13 = arith.addf %10, %12 : vector<1x256xf32>
    %14 = arith.negf %13 : vector<1x256xf32>
    %15 = math.exp %14 : vector<1x256xf32>
    %cst_11 = arith.constant 1.000000e+00 : f32
    %16 = vector.broadcast %cst_11 : f32 to vector<1x256xf32>
    %17 = arith.addf %16, %15 : vector<1x256xf32>
    %18 = arith.divf %16, %17 : vector<1x256xf32>
    %c0_12 = arith.constant 0 : index
    %c0_13 = arith.constant 0 : index
    %c0_14 = arith.constant 0 : index
    %19 = vector.load %arg7[%c0_12, %c0_13, %c0_14] : memref<1x1x256xf32, #tpu.memory_space<vmem>>, vector<1x1x256xf32>
    %20 = vector.shape_cast %19 : vector<1x1x256xf32> to vector<1x256xf32>
    %21 = vector.shape_cast %18 : vector<1x256xf32> to vector<1x1x256xf32>
    tpu.vector_store %arg7[%c0_12, %c0_13, %c0_14], %21 {strides = array<i32>} : memref<1x1x256xf32, #tpu.memory_space<vmem>>, vector<1x1x256xf32>,
    %c1 = arith.constant 1 : index
    %22 = memref.load %arg6[%c1] : memref<2xf32, #tpu.memory_space<smem>>
    %23 = vector.broadcast %22 : f32 to vector<1x256xf32>
    %24 = arith.cmpf ogt, %18, %23 : vector<1x256xf32>
    %25 = arith.extui %24 : vector<1x256xi1> to vector<1x256xi32>
    %c0_15 = arith.constant 0 : index
    %c0_16 = arith.constant 0 : index
    %c0_17 = arith.constant 0 : index
    %26 = vector.load %arg8[%c0_15, %c0_16, %c0_17] : memref<1x1x256xi32, #tpu.memory_space<vmem>>, vector<1x1x256xi32>
    %27 = vector.shape_cast %26 : vector<1x1x256xi32> to vector<1x256xi32>
    %28 = vector.shape_cast %25 : vector<1x256xi32> to vector<1x1x256xi32>
    tpu.vector_store %arg8[%c0_15, %c0_16, %c0_17], %28 {strides = array<i32>} : memref<1x1x256xi32, #tpu.memory_space<vmem>>, vector<1x1x256xi32>,
    return
  }
  func.func @transform_0(%arg0: i32, %arg1: i32) -> (i32, i32, i32) {
    %c0_i32 = arith.constant 0 : i32
    %c0_i32_0 = arith.constant 0 : i32
    return %arg0, %c0_i32, %arg1 : i32, i32, i32
  }
  func.func @transform_1(%arg0: i32, %arg1: i32) -> (i32, i32) {
    %c0_i32 = arith.constant 0 : i32
    %c0_i32_0 = arith.constant 0 : i32
    %c0_i32_1 = arith.constant 0 : i32
    return %c0_i32, %c0_i32_0 : i32, i32
  }
  func.func @transform_2(%arg0: i32, %arg1: i32) -> (i32, i32) {
    %c0_i32 = arith.constant 0 : i32
    %c0_i32_0 = arith.constant 0 : i32
    %c0_i32_1 = arith.constant 0 : i32
    return %c0_i32, %c0_i32_0 : i32, i32
  }
  func.func @transform_3(%arg0: i32, %arg1: i32) -> (i32, i32) {
    %c0_i32 = arith.constant 0 : i32
    %c0_i32_0 = arith.constant 0 : i32
    %c0_i32_1 = arith.constant 0 : i32
    return %c0_i32, %c0_i32_0 : i32, i32
  }
  func.func @transform_4(%arg0: i32, %arg1: i32) -> i32 {
    %c0_i32 = arith.constant 0 : i32
    %c0_i32_0 = arith.constant 0 : i32
    return %c0_i32 : i32
  }
  func.func @transform_5(%arg0: i32, %arg1: i32) -> (i32, i32, i32) {
    %c0_i32 = arith.constant 0 : i32
    %c0_i32_0 = arith.constant 0 : i32
    return %arg0, %c0_i32, %arg1 : i32, i32, i32
  }
  func.func @transform_6(%arg0: i32, %arg1: i32) -> (i32, i32, i32) {
    %c0_i32 = arith.constant 0 : i32
    %c0_i32_0 = arith.constant 0 : i32
    return %arg0, %c0_i32, %arg1 : i32, i32, i32
  }
}

</mosaic_0001>

<bundles_post_ra>
// kernel: tpu_custom_call.1
= control target key start
LH: loop header
LB: loop body
LE: loop exit
PB: predicated region body
PF: predicated region fallthrough
CT: control target
= control target key end

     0   :  { %s1435_s0 = inlined_call_operand.hbm [shape: f32[2,64,256], index: 0, kind: input, shape index: {}]   ;;  %s1436_s1 = inlined_call_operand.vmem [shape: f32[32,64], index: 1, kind: input, shape index: {}]   ;;  %s1437_s2 = inlined_call_operand.vmem [shape: f32[32,1], index: 2, kind: input, shape index: {}]   ;;  %s1438_s3 = inlined_call_operand.vmem [shape: f32[1,32], index: 3, kind: input, shape index: {}]   ;;  %s1439_s4 = inlined_call_operand.vmem [shape: f32[2], index: 4, kind: input, shape index: {}]   ;;  %s1440_s5 = inlined_call_operand.hbm [shape: f32[2,1,256], index: 5, kind: output, shape index: {0}]   ;;  %s1441_s6 = inlined_call_operand.hbm [shape: s32[2,1,256], index: 6, kind: output, shape index: {1}]  }
   0x1   :  { %1446 = sst [smem:[#allocation14_spill]] %s1439_s4 }
   0x2   :  { %12 = vsyncpa [#allocation3], 0 }
   0x3   :  { %14 = vsyncpa [#allocation3 + $0x1], 0 }
   0x4   :  { %15 = vsyncpa [#allocation5], 0 }
   0x5   :  { %16 = vsyncpa [#allocation4], 0 }
   0x6   :  { %18 = vsyncpa [#allocation4 + $0x1], 0 }
   0x7   :  { %19 = vsyncpa [#allocation9], 0 }
   0x8   :  { %21 = vsyncpa [#allocation9 + $0x1], 0  ;;  %s1134_s21 = smov 0   ;;  %s1136_s22 = smov 0  }
   0x9   :  { %s1138_s23 = smov 0   ;;  %s1140_s24 = smov 0  }
   0xa   :  { %s1142_s25 = smov 0   ;;  %s1144_s26 = smov 0  }
   0xb LB: > { %s776_s27 = sadd.s32 4294967295, %s1088_s26   ;;  %s777_s28 = sadd.s32 4294967294, %s1088_s26   ;;  %s1088_s26 = sphi %s1144_s26, %s27_s26   ;;  %s1084_s25 = sphi %s1142_s25, %s1469_s25   ;;  %s1080_s24 = sphi %s1140_s24, %s1468_s24   ;;  %s1076_s23 = sphi %s1138_s23, %s1467_s23   ;;  %s1072_s22 = sphi %s1136_s22, %s1466_s22   ;;  %s1068_s21 = sphi %s1134_s21, %s1465_s21  }
   0xc   : > { %p55_p0 = scmp.ne.s32.totalorder %s1076_s23, %s1072_s22  ;;  %p56_p1 = scmp.eq.s32.totalorder %s1088_s26, 0 }
   0xd   : > { %p61_p2 = scmp.ne.s32.totalorder %s1072_s22, %s1068_s21  ;;  %p1172_p3 = scmp.eq.s32.totalorder %s776_s27, 0 }
   0xe   : > { %p171_p4 = scmp.eq.s32.totalorder %s776_s27, 1  ;;  %p1176_p5 = por %p56_p1, %p55_p0 }
   0xf   : > { %s1447_s30 = scalar_select %p1172_p3, 1, 0 }
  0x10   : > { %p177_p6 = scmp.eq.s32.totalorder %s777_s28, 1  ;;  %p1182_p7 = por %p1172_p3, %p61_p2 }
  0x11   : > { %p1186_p8 = por %p171_p4, %p55_p0  ;;  %p778_p10 = scmp.ge.s32.totalorder %s1088_s26, 1 }
  0x12   : > { %s1449_s8 = scalar_select %p1182_p7, 1, 0 }
  0x13   : > { %s1450_s9 = scalar_select %p1186_p8, 1, 0 }
  0x14   : > { %p1190_p9 = por %p177_p6, %p61_p2  ;;  %p212_p11 = scmp.lt.s32.totalorder %s1088_s26, 3 }
  0x15   : > { %s1452_s4 = sld [smem:[#allocation14_spill]]  ;;  %p858_p0 = scmp.lt.s32.totalorder %s1088_s26, 2 }
  0x16   : > { %s1451_s10 = scalar_select %p1190_p9, 1, 0 }
  0x17   : > { %p1199_p12 = pnand %p778_p10, %p212_p11  ;;  %p1209_p2 = pnand %p858_p0, %p1176_p5 }
  0x18   : > { %s39_s17 = sadd.s32 1, %s1084_s25  ;;  %s245_s19 = sand.u32 1, %s1076_s23  }
  0x19   : > { %p842_p1 = pneg %p1199_p12  ;;  %p1220_p6 = scmp.ge.s32.totalorder %s39_s17, 2 }
  0x1b   : > { %s234_s13 = sshll.u32 %s1452_s4, 4  ;;  %p1215_p4 = pnand %p842_p1, %p1172_p3  ;;  %s235_s13 = int_to_ptr.vmem [resolvable:$true] %s234_s13 }
  0x1c   : > { %s925_s20 = scalar_lea.vmem %s235_s13, 16  ;;  %p933_p13 = scmp.lt.s32.totalorder %s235_s13, %s235_s13 }
  0x1d   : > { %p926_p10 = scmp.ne.s32.totalorder %s235_s13, %s925_s20  ;;  %p927_p11 = pneg %p1215_p4 }
  0x1e   : > { %p934_p9 = scmp.lt.s32.totalorder %s925_s20, %s925_s20 }
  0x1f   : > { %p928_p5 = pnand %p927_p11, %p926_p10 }
  0x20   : > { %p935_p8 = por %p934_p9, %p933_p13 }
  0x21   : > { %p929_p0 = pneg %p928_p5 }
  0x23   : > { %p936_p1 = pnand %p935_p8, %p929_p0 }
  0x25   : > { %939 = shalt.err (!%p936_p1)
}
  0x26   : > { %s1090_s27 = smov [#allocation6]   ;;  %s1471_s17 = smov (%p1220_p6, %s39_s17), 0 }
  0x27   : > { %845 = dma.vmem_to_smem (!%p1215_p4), %s235_s13, 16, %s1090_s27, [#allocation5]  }
  0x28   : > { %s781_s28 = sshll.u32 %s245_s19, 7  ;;  %s43_s7 = ssub.s32 %s1084_s25, %s1471_s17 }
  0x29   : > { %p46_p9 = scmp.eq.s32.totalorder %s43_s7, 0  ;;  %s805_s11 = sshll.u32 %s1084_s25, 11 }
  0x2a   : > { %s1239_s16 = scalar_lea.hbm %s1435_s0, %s805_s11  ;;  %s249_s29 = scalar_lea.vmem [#allocation2], %s781_s28 }
  0x2b   : > { %s258_s4 = sshll.u32 %s249_s29, 4  ;;  %s1457_s13 = sadd.s32 1, %s1076_s23  ;;  %s1246_s4 = int_to_ptr.vmem [resolvable:$true] %s258_s4 }
  0x2c   : > { %s1244_s18 = scalar_select %p46_p9, %s1076_s23, %s1457_s13  }
  0x2d   : > { %s1248_s27 = scalar_lea.sflag [#allocation3], %s245_s19  ;;  %s940_s7 = scalar_lea.hbm %s1239_s16, 2048 }
  0x2e   : > { %p941_p8 = scmp.ne.s32.totalorder %s1239_s16, %s940_s7  ;;  %p942_p13 = pneg %p1209_p2 }
  0x2f   : > { %s945_s28 = scalar_lea.hbm %s1435_s0, 4096  ;;  %p946_p10 = scmp.lt.u32.totalorder %s1239_s16, %s1435_s0 }
  0x30   : > { %p943_p4 = pnand %p942_p13, %p941_p8  ;;  %p947_p11 = scmp.lt.u32.totalorder %s945_s28, %s940_s7 }
  0x31   : > { %p949_p0 = scmp.lt.u32.totalorder %s940_s7, %s1239_s16 }
  0x32   : > { %p944_p6 = pneg %p943_p4  ;;  %p948_p5 = por %p947_p11, %p946_p10 }
  0x34   : > { %p950_p1 = por %p949_p0, %p948_p5 }
  0x36   : > { %p951_p9 = pnand %p950_p1, %p944_p6 }
  0x38   : > { %954 = shalt.err (!%p951_p9)
}
  0x39   : > { %s955_s19 = scalar_lea.vmem %s1246_s4, 2048  ;;  %s1091_s13 = smov [#allocation2]  }
  0x3a   : > { %p956_p8 = scmp.ne.s32.totalorder %s1246_s4, %s955_s19  ;;  %s960_s11 = sshll.u32 %s1091_s13, 4  ;;  %s961_s11 = int_to_ptr.vmem [resolvable:$false] %s960_s11 }
  0x3b   : > { %s962_s12 = scalar_lea.vmem %s961_s11, 4096  ;;  %p963_p7 = scmp.lt.s32.totalorder %s1246_s4, %s961_s11 }
  0x3c   : > { %p958_p4 = pnand %p956_p8, %p942_p13  ;;  %p964_p10 = scmp.lt.s32.totalorder %s962_s12, %s955_s19 }
  0x3e   : > { %p959_p3 = pneg %p958_p4  ;;  %p965_p11 = por %p964_p10, %p963_p7 }
  0x40   : > { %p966_p5 = pnand %p965_p11, %p959_p3 }
  0x42   : > { %969 = shalt.err (!%p966_p5)
}
  0x43   : > { %s1092_s7 = smov 256   ;;  %s1093_s28 = smov 16  }
  0x44   : > { %849 = dma.hbm_to_vmem [thread:$0]  (!%p1209_p2), %s1239_s16, 2048, %s1246_s4, %s1248_s27, %s1092_s7, %s1092_s7, %s1093_s28  }
  0x45   : > { %270 = sbr.rel (%p1199_p12) target bundleno = 620 (0x26c), region = 40  ;;  %s1279_s29 = sand.u32 (!%p1199_p12), 1, %s1072_s22  }
  0x46   : > { %s785_s20 = sshll.u32 (!%p1199_p12), %s1279_s29, 7  ;;  %s273_s19 = scalar_lea.sflag (!%p1199_p12), [#allocation3], %s1279_s29 }
  0x47   : > { %s1283_s13 = scalar_lea.vmem (!%p1199_p12), [#allocation2], %s785_s20  ;;  %p1458_p3 = scmp.ne.s32.totalorder (!%p1199_p12), %s1449_s8, 0 }
  0x4c   : > { %1051 = dma.done.wait (%p1458_p3), %s273_s19, 2048  }
  0x4d   : > { %1053 = vsyncadd (%p1458_p3), %s273_s19, 4294965248  ;;  %p1459_p7 = scmp.ne.s32.totalorder %s1447_s30, 0 }
  0x4f   : > { %1055 = dma.done.wait (%p1459_p7), [#allocation5], 16  }
  0x50   : > { %1057 = vsyncadd (%p1459_p7), [#allocation5], 4294967280 }
  0x51   : > { %285 = sfence }
  0x52   : > { %v319_v0 = vld [vmem:[%s1283_s13 + $0x8] sm:$0xff]  ;;  %v321_v1 = vld [vmem:[%s1283_s13 + $0x18] sm:$0xff]  ;;  %v318_v2 = vld [vmem:[%s1283_s13] sm:$0xff]  ;;  %v1094_v7 = vmov 0.0   ;;  %v1095_v8 = vmov 0   ;;  %vm362_vm0 = vcmask 523264  }
  0x53   : > { %v808_v3 = vpack.c.bf16 %v321_v1, %v319_v0  ;;  %v320_v4 = vld [vmem:[%s1283_s13 + $0x10] sm:$0xff]  ;;  %v323_v5 = vld [vmem:[%s1283_s13 + $0x28] sm:$0xff]  ;;  %v325_v6 = vld [vmem:[%s1283_s13 + $0x38] sm:$0xff]  ;;  %439 = vmatprep.mubr.f32.mxu0 %v1094_v7  ;;  %915 = vset.pattern.permute.xlu0 %v1095_v8  ;;  %vm475_vm1 = vcmask 261120   ;;  %s473_s15 = sld [smem:[#allocation6]]  ;;  %s796_s16 = sld [smem:[#allocation6 + $0x1]] }
  0x54   : > { %v810_v9 = vpack.c.bf16 %v320_v4, %v318_v2  ;;  %v812_v10 = vpack.c.bf16 %v325_v6, %v323_v5  ;;  %v322_v11 = vld [vmem:[%s1283_s13 + $0x20] sm:$0xff]  ;;  %v324_v12 = vld [vmem:[%s1283_s13 + $0x30] sm:$0xff]  ;;  %v327_v13 = vld [vmem:[%s1283_s13 + $0x48] sm:$0xff]  ;;  %916 = vset.pattern.permute.xlu1 %v1095_v8  ;;  %543 = vmatprep.mubr.f32.mxu1 %v1094_v7  ;;  %s787_s27 = sshll.u32 %s1279_s29, 1  ;;  %s806_s11 = sshll.u32 %s1080_s24, 5 }
  0x55   : > { %809 = vmatprep.subr.bf16.mxu0 %v808_v3  ;;  %v329_v14 = vld [vmem:[%s1283_s13 + $0x58] sm:$0xff]  ;;  %v814_v15 = vpack.c.bf16 %v324_v12, %v322_v11  ;;  %v326_v17 = vld [vmem:[%s1283_s13 + $0x40] sm:$0xff]  ;;  %v328_v18 = vld [vmem:[%s1283_s13 + $0x50] sm:$0xff]  ;;  %s307_s12 = scalar_lea.vmem [#allocation7], %s787_s27  ;;  %s1346_s28 = scalar_lea.vmem [#allocation8], %s787_s27 }
  0x56   : > { %811 = vmatpush1.bf16.msra.mxu0 %v810_v9  ;;  %v816_v16 = vpack.c.bf16 %v329_v14, %v327_v13  ;;  %v331_v19 = vld [vmem:[%s1283_s13 + $0x68] sm:$0xff]  ;;  %v333_v20 = vld [vmem:[%s1283_s13 + $0x78] sm:$0xff]  ;;  %v338_v21 = vld [vmem:[%s1437_s2] sm:$0xff]  ;;  %v818_v23 = vpack.c.bf16 %v328_v18, %v326_v17  ;;  %v568_v17 = vlaneseq  ;;  %s629_s7 = sshll.u32 %s307_s12, 4  ;;  %s645_s20 = sshll.u32 %s1346_s28, 4  ;;  %s1354_s7 = int_to_ptr.vmem [resolvable:$true] %s629_s7  ;;  %s1363_s20 = int_to_ptr.vmem [resolvable:$true] %s645_s20 }
  0x57   : > { %813 = vmatprep.subr.bf16.mxu0 %v812_v10  ;;  %344 = vperm.xlu0 %915, %v338_v21   ;;  %v340_v22 = vld [vmem:[%s1437_s2 + $0x10] sm:$0xff]  ;;  %v339_v24 = vld [vmem:[%s1437_s2 + $0x8] sm:$0xff]  ;;  %v820_v25 = vpack.c.bf16 %v333_v20, %v331_v19  ;;  %v330_v26 = vld [vmem:[%s1283_s13 + $0x60] sm:$0xff]  ;;  %s1352_s24 = scalar_lea.hbm %s1440_s5, %s806_s11  ;;  %s1361_s8 = scalar_lea.hbm %s1441_s6, %s806_s11 }
  0x58   : > { %354 = vperm.xlu1 %916, %v340_v22   ;;  %v332_v27 = vld [vmem:[%s1283_s13 + $0x70] sm:$0xff]  ;;  %v341_v28 = vld [vmem:[%s1437_s2 + $0x18] sm:$0xff]  ;;  %v334_v30 = vld [vmem:[%s1436_s1] sm:$0xff]  ;;  %v569_v19 = vshrl.u32 %v568_v17, 7  ;;  %vm1342_vm4 = vcmp.lt.s32.totalorder %v568_v17, 256  ;;  %s608_s14 = scalar_lea.sflag [#allocation4], %s1279_s29 }
  0x59   : > { %v822_v29 = vpack.c.bf16 %v332_v27, %v330_v26  ;;  %v335_v31 = vld [vmem:[%s1436_s1 + $0x8] sm:$0xff]  ;;  %v336_v32 = vld [vmem:[%s1436_s1 + $0x10] sm:$0xff]  ;;  %v337_v33 = vld [vmem:[%s1436_s1 + $0x18] sm:$0xff]  ;;  %v474_v3 = vstv %s473_s15  ;;  %s970_s15 = scalar_lea.vmem %s1354_s7, 32  ;;  %p1462_p2 = scmp.ne.s32.totalorder %s1450_s9, 0 }
  0x5a   : > { %815 = vmatpush1.bf16.msra.mxu0 %v814_v15  ;;  %v472_v2 = vld [vmem:[%s1438_s3] sm:$0x1]  ;;  %v1096_v15 = vmov 1966171168   ;;  %v586_v20 = vstv %s796_s16  ;;  %p971_p12 = scmp.ne.s32.totalorder %s1354_s7, %s970_s15  ;;  %s1097_s16 = smov [#allocation7]  }
  0x5b   : > { %817 = vmatprep.subr.bf16.mxu0 %v816_v16  ;;  %349 = vperm.xlu0 %915, %v339_v24   ;;  %v566_v16 = vunpack.c.l.s4 %v1096_v15  ;;  %s974_s27 = sshll.u32 %s1097_s16, 4  ;;  %s975_s27 = int_to_ptr.vmem [resolvable:$false] %s974_s27 }
  0x5c   : > { %359 = vperm.xlu1 %916, %v341_v28   ;;  %p972_p13 = pnand %p971_p12, %p1462_p2  ;;  %s976_s19 = scalar_lea.vmem %s975_s27, 64 }
  0x5d   : > { %v567_v18 = vunpack.c.0.s8 %v566_v16  ;;  %p977_p0 = scmp.lt.s32.totalorder %s1354_s7, %s975_s27  ;;  %p978_p1 = scmp.lt.s32.totalorder %s976_s19, %s970_s15 }
  0x5e   : > { %819 = vmatpush1.bf16.msra.mxu0 %v818_v23  ;;  %p973_p6 = pneg %p972_p13 }
  0x5f   : > { %821 = vmatprep.subr.bf16.mxu0 %v820_v25  ;;  %v570_v22 = vsub.s32 %v567_v18, %v569_v19  ;;  %p979_p9 = por %p978_p1, %p977_p0 }
  0x61   : > { %p980_p8 = pnand %p979_p9, %p973_p6 }
  0x62   : > { %823 = vmatpush1.bf16.msra.mxu0 %v822_v29 }
  0x65   : > { %789 = vmatmul.mubr.msk.f32.vlgmr.msra.gmra.mrb[0].mxu0 %vm362_vm0, %v334_v30 }
  0x66   : > { %445 = vmatprep.mubr.f32.mxu0 %v1094_v7 }
  0x69   : > { %790 = vmatmul.mubr.msk.f32.gmra.mrb[2].mxu0 %vm362_vm0, %v335_v31 }
  0x6a   : > { %451 = vmatprep.mubr.f32.mxu0 %v1094_v7 }
  0x6d   : > { %791 = vmatmul.mubr.msk.f32.gmra.mrb[4].mxu0 %vm362_vm0, %v336_v32 }
  0x6e   : > { %457 = vmatprep.mubr.f32.mxu0 %v1094_v7 }
  0x71   : > { %792 = vmatmul.mubr.msk.f32.gmra.mrb[6].mxu0 %vm362_vm0, %v337_v33 }
  0xd6   : > { %v345_v34 = vpop.permute.xlu0 %344 }
  0xd7   : > { %v355_v43 = vpop.permute.xlu1 %354 }
  0xda   : > { %v350_v37 = vpop.permute.xlu0 %349 }
  0xdb   : > { %v360_v54 = vpop.permute.xlu1 %359 }
 0x138   : > { %v441_v35 = vpop.f32.mrb[0].mxu0 }
 0x139   : > { %v443_v36 = vpop.f32.mrb[1].mxu0  ;;  %v442_v38 = vadd.f32 %v441_v35, %v345_v34 }
 0x13a   : > { %v444_v39 = vadd.f32 %v443_v36, %v345_v34 }
 0x13b   : > { %v464_v45 = vmax.f32 %v442_v38, 0.0 }
 0x13c   : > { %v447_v40 = vpop.f32.mrb[2].mxu0  ;;  %v465_v47 = vmax.f32 %v444_v39, 0.0 }
 0x13d   : > { %v448_v41 = vadd.f32 %v447_v40, %v350_v37  ;;  %v449_v42 = vpop.f32.mrb[3].mxu0 }
 0x13e   : > { %v450_v44 = vadd.f32 %v449_v42, %v350_v37 }
 0x13f   : > { %v466_v46 = vmax.f32 %v448_v41, 0.0 }
 0x140   : > { %v467_v48 = vmax.f32 %v450_v44, 0.0  ;;  %v453_v49 = vpop.f32.mrb[4].mxu0 }
 0x141   : > { %v455_v50 = vpop.f32.mrb[5].mxu0  ;;  %v826_v51 = vpack.c.bf16 %v466_v46, %v464_v45  ;;  %v454_v53 = vadd.f32 %v453_v49, %v355_v43 }
 0x142   : > { %v824_v52 = vpack.c.bf16 %v467_v48, %v465_v47  ;;  %v456_v55 = vadd.f32 %v455_v50, %v355_v43 }
 0x143   : > { %v468_v60 = vmax.f32 %v454_v53, 0.0 }
 0x144   : > { %v459_v56 = vpop.f32.mrb[6].mxu0  ;;  %825 = vmatprep.subr.bf16.mxu1 %v824_v52  ;;  %v469_v62 = vmax.f32 %v456_v55, 0.0 }
 0x145   : > { %v460_v57 = vadd.f32 %v459_v56, %v360_v54  ;;  %v461_v58 = vpop.f32.mrb[7].mxu0  ;;  %827 = vmatpush1.bf16.msra.mxu1 %v826_v51 }
 0x146   : > { %v462_v59 = vadd.f32 %v461_v58, %v360_v54 }
 0x147   : > { %v470_v61 = vmax.f32 %v460_v57, 0.0 }
 0x148   : > { %v471_v63 = vmax.f32 %v462_v59, 0.0 }
 0x149   : > { %v830_v0 = vpack.c.bf16 %v470_v61, %v468_v60 }
 0x14a   : > { %v828_v1 = vpack.c.bf16 %v471_v63, %v469_v62 }
 0x14c   : > { %829 = vmatprep.subr.bf16.mxu1 %v828_v1 }
 0x14d   : > { %831 = vmatpush1.bf16.msra.mxu1 %v830_v0 }
 0x150   : > { %793 = vmatmul.mubr.msk.f32.vlgmr.msra.gmra.mrb[0].mxu1 %vm475_vm1, %v472_v2 }
 0x223   : > { %v545_v4 = vpop.f32.mrb[0].mxu1 }
 0x224   : > { %v546_v5 = vadd.f32 %v545_v4, %v474_v3  ;;  %v547_v6 = vpop.f32.mrb[1].mxu1 }
 0x225   : > { %v548_v7 = vadd.f32 %v547_v6, %v474_v3 }
 0x226   : > { %v794_v9 = vmul.f32 -1.442695, %v546_v5 }
 0x227   : > { %v795_v10 = vmul.f32 -1.442695, %v548_v7 }
 0x228   : > { %917 = vpow2.f32 %v794_v9 }
 0x229   : > { %919 = vpow2.f32 %v795_v10 }
 0x232   : > { %v918_v11 = vpop.eup %917 }
 0x233   : > { %v920_v12 = vpop.eup %919  ;;  %v556_v13 = vadd.f32 1.0, %v918_v11 }
 0x234   : > { %v557_v14 = vadd.f32 1.0, %v920_v12 }
 0x235   : > { %921 = vrcp.f32 %v556_v13 }
 0x236   : > { %923 = vrcp.f32 %v557_v14 }
 0x23f   : > { %v922_v21 = vpop.eup %921 }
 0x240   : > { %v924_v23 = vpop.eup %923  ;;  %vm587_vm2 = vcmp.gt.f32.partialorder %v922_v21, %v586_v20 }
 0x241   : > { %v564_v24 = vcombine.low %v922_v21, %v924_v23  ;;  %vm588_vm3 = vcmp.gt.f32.partialorder %v924_v23, %v586_v20  ;;  %v589_v25 = vsel %vm587_vm2, 1, %v1095_v8 }
 0x242   : > { %v590_v26 = vsel %vm588_vm3, 1, %v1095_v8 }
 0x243   : > { %v571_v27 = vrot.slane %v564_v24, %v570_v22  ;;  %v591_v28 = vcombine.low %v589_v25, %v590_v26 }
 0x245   : > { %v578_v30 = vrot.slane %v571_v27, %v570_v22  ;;  %v598_v8 = vrot.slane %v591_v28, %v570_v22 }
 0x247   : > { %584 = vst.msk [vmem:[%s307_s12] sm:$0x3] %vm1342_vm4, %v578_v30  ;;  %v605_v31 = vrot.slane %v598_v8, %v570_v22 }
 0x248   : > { %983 = shalt.err (!%p980_p8)
}
 0x249   : > { %s984_s11 = scalar_lea.hbm %s1352_s24, 32  ;;  %s988_s4 = scalar_lea.hbm %s1440_s5, 64 }
 0x24a   : > { %p985_p4 = scmp.ne.s32.totalorder %s1352_s24, %s984_s11  ;;  %p989_p5 = scmp.lt.u32.totalorder %s1352_s24, %s1440_s5 }
 0x24b   : > { %p990_p3 = scmp.lt.u32.totalorder %s988_s4, %s984_s11  ;;  %p992_p12 = scmp.lt.u32.totalorder %s984_s11, %s1352_s24 }
 0x24c   : > { %p986_p10 = pnand %p985_p4, %p1462_p2 }
 0x24d   : > { %p991_p7 = por %p990_p3, %p989_p5 }
 0x24e   : > { %p987_p11 = pneg %p986_p10 }
 0x24f   : > { %p993_p13 = por %p992_p12, %p991_p7 }
 0x251   : > { %p994_p6 = pnand %p993_p13, %p987_p11 }
 0x253   : > { %997 = shalt.err (!%p994_p6)
}
 0x254   : > { %838 = dma.vmem_to_hbm [thread:$0]  (%p1462_p2), %s1354_s7, 32, %s1352_s24, %s608_s14   ;;  %606 = vst.msk [vmem:[%s1346_s28] sm:$0x3] %vm1342_vm4, %v605_v31 }
 0x255   : > { %s613_s15 = scalar_lea.sflag [#allocation9], %s1279_s29  ;;  %s998_s27 = scalar_lea.vmem %s1363_s20, 32 }
 0x256   : > { %p999_p0 = scmp.ne.s32.totalorder %s1363_s20, %s998_s27  ;;  %s1098_s19 = smov [#allocation8]  }
 0x257   : > { %s1002_s11 = sshll.u32 %s1098_s19, 4  ;;  %s1003_s11 = int_to_ptr.vmem [resolvable:$false] %s1002_s11 }
 0x258   : > { %p1000_p1 = pnand %p999_p0, %p1462_p2  ;;  %s1004_s12 = scalar_lea.vmem %s1003_s11, 64 }
 0x259   : > { %p1005_p8 = scmp.lt.s32.totalorder %s1363_s20, %s1003_s11  ;;  %p1006_p4 = scmp.lt.s32.totalorder %s1004_s12, %s998_s27 }
 0x25a   : > { %p1001_p9 = pneg %p1000_p1 }
 0x25b   : > { %p1007_p10 = por %p1006_p4, %p1005_p8 }
 0x25d   : > { %p1008_p11 = pnand %p1007_p10, %p1001_p9 }
 0x25f   : > { %1011 = shalt.err (!%p1008_p11)
}
 0x260   : > { %s1012_s29 = scalar_lea.hbm %s1361_s8, 32  ;;  %s1016_s24 = scalar_lea.hbm %s1441_s6, 64 }
 0x261   : > { %p1013_p5 = scmp.ne.s32.totalorder %s1361_s8, %s1012_s29  ;;  %p1017_p12 = scmp.lt.u32.totalorder %s1361_s8, %s1441_s6 }
 0x262   : > { %p1018_p13 = scmp.lt.u32.totalorder %s1016_s24, %s1012_s29  ;;  %p1020_p0 = scmp.lt.u32.totalorder %s1012_s29, %s1361_s8 }
 0x263   : > { %p1014_p3 = pnand %p1013_p5, %p1462_p2 }
 0x264   : > { %p1019_p6 = por %p1018_p13, %p1017_p12 }
 0x265   : > { %p1015_p7 = pneg %p1014_p3 }
 0x266   : > { %p1021_p1 = por %p1020_p0, %p1019_p6 }
 0x268   : > { %p1022_p9 = pnand %p1021_p1, %p1015_p7 }
 0x26a   : > { %1025 = shalt.err (!%p1022_p9)
}
 0x26b   : > { %839 = dma.vmem_to_hbm [thread:$0]  (%p1462_p2), %s1363_s20, 32, %s1361_s8, %s613_s15  }
 0x26c PF: > { %s657_s4 = sand.u32 1, %s1068_s21   ;;  %p1463_p8 = scmp.ne.s32.totalorder %s1451_s10, 0 }
 0x26d   : > { %p1464_p4 = scmp.ge.s32.totalorder %s1088_s26, 2  ;;  %s658_s30 = scalar_lea.sflag [#allocation4], %s657_s4 }
 0x26f   : > { %p851_p10 = pnand %p1464_p4, %p1463_p8 }
 0x271   : > { %1059 = dma.done.wait (!%p851_p10), %s658_s30, 32  }
 0x272   : > { %1061 = vsyncadd (!%p851_p10), %s658_s30, 4294967264  ;;  %s667_s16 = scalar_lea.sflag [#allocation9], %s657_s4 }
 0x273   : > { %1063 = dma.done.wait (!%p851_p10), %s667_s16, 32  }
 0x274   : > { %1065 = vsyncadd (!%p851_p10), %s667_s16, 4294967264  ;;  %s27_s26 = sadd.s32 1, %s1088_s26   ;;  %s1465_s21 = smov %s1072_s22 }
 0x275   : > { %p24_p11 = scmp.ge.s32.totalorder %s27_s26, 4   ;;  %s1466_s22 = smov %s1076_s23 }
 0x276   : > { %s1467_s23 = smov %s1244_s18  ;;  %s1468_s24 = smov %s1084_s25 }
 0x277   : > { %s1469_s25 = smov %s1471_s17  ;;  %26 = sbr.rel (!%p24_p11) target bundleno = 11 (0xb), region = 107 }
 0x27e   :  { %672 = vsyncpa [#allocation3], 1 }
 0x27f   :  { %674 = vsyncpa [#allocation3 + $0x1], 1 }
 0x280   :  { %675 = vsyncpa [#allocation4], 1 }
 0x281   :  { %677 = vsyncpa [#allocation4 + $0x1], 1 }
 0x282   :  { %678 = vsyncpa [#allocation9], 1 }
 0x283   :  { %680 = vsyncpa [#allocation9 + $0x1], 1 }
 0x284   :  { %681 = vsyncpa [#allocation5], 1 }
 0x285   :  { %683 = vsyncpa [#allocation5 + $0x1], 1 }

</bundles_post_ra>
